<compile_context>
chip_gen: v6e
topology: v6e:2x2x1
jax: 0.10.0
libtpu: 0.0.40
codegen_flags: <defaults>
</compile_context>

<pallas_src>
import jax
import jax.numpy as jnp
from jax.experimental import pallas as pl
from jax.experimental.pallas import tpu as pltpu


def _triplet_avg_kernel(x_ref, w_ref, b_ref, o_ref):
    # x_ref: (3, tb, D_in)   w_ref: (3, D_in, D_out)   b_ref: (1, D_out)
    # Three K=D_in MXU dots summed into one f32 accumulator -- numerically the
    # same head-sum as the module, with no in-VMEM reshuffle/transpose of x.
    acc = jnp.dot(x_ref[0], w_ref[0], preferred_element_type=jnp.float32)
    acc = acc + jnp.dot(x_ref[1], w_ref[1], preferred_element_type=jnp.float32)
    acc = acc + jnp.dot(x_ref[2], w_ref[2], preferred_element_type=jnp.float32)
    # Pre-summed bias added once; /3.0 realized as a VPU multiply by 1/3.
    o_ref[...] = ((acc + b_ref[...]) * jnp.float32(1.0 / 3.0)).astype(o_ref.dtype)


def make_triplet_avg(w1, w2, w3, b1, b2, b3, *, block_rows=256):
    """Init-time factory: stacks weights / sums biases ONCE and returns a
    jitted forward whose per-call path only touches x."""
    D_in, D_out = w1.shape
    w_stack = jnp.stack([w1, w2, w3], axis=0)          # (3, D_in, D_out), hoisted
    b_sum = (b1 + b2 + b3).reshape(1, D_out)           # (1, D_out), hoisted

    @jax.jit
    def forward(x):
        three, B, d_in = x.shape
        assert three == 3 and d_in == D_in
        tb = B if B <= block_rows else block_rows
        # TODO(synk): pad ragged batches up to a multiple of block_rows.
        assert B % tb == 0, "batch must divide the row block"
        grid = (B // tb,)

        return pl.pallas_call(
            _triplet_avg_kernel,
            out_shape=jax.ShapeDtypeStruct((B, D_out), jnp.float32),
            grid_spec=pltpu.PrefetchScalarGridSpec(
                num_scalar_prefetch=0,
                grid=grid,
                in_specs=[
                    # x tiled over rows; weights/bias resident across the grid.
                    pl.BlockSpec((3, tb, D_in), lambda i: (0, i, 0)),
                    pl.BlockSpec((3, D_in, D_out), lambda i: (0, 0, 0)),
                    pl.BlockSpec((1, D_out), lambda i: (0, 0)),
                ],
                out_specs=pl.BlockSpec((tb, D_out), lambda i: (i, 0)),
            ),
            compiler_params=pltpu.CompilerParams(
                dimension_semantics=("parallel",)),   # shards rows across TCs on v7x
        )(x, w_stack, b_sum)

    return forward


def reference(x, w1, w2, w3, b1, b2, b3):
    y1 = x[0] @ w1 + b1
    y2 = x[1] @ w2 + b2
    y3 = x[2] @ w3 + b3
    return (y1 + y2 + y3) / 3.0


if __name__ == "__main__":
    B, D_in, D_out = 8, 32, 32

    key = jax.random.PRNGKey(0)
    kx, kw1, kw2, kw3, kb1, kb2, kb3 = jax.random.split(key, 7)

    # Deterministic synthetic parameters (no checkpoint load).
    x = jax.random.normal(kx, (3, B, D_in), dtype=jnp.float32)
    scale = 1.0 / jnp.sqrt(jnp.float32(D_in))
    w1 = jax.random.normal(kw1, (D_in, D_out), dtype=jnp.float32) * scale
    w2 = jax.random.normal(kw2, (D_in, D_out), dtype=jnp.float32) * scale
    w3 = jax.random.normal(kw3, (D_in, D_out), dtype=jnp.float32) * scale
    b1 = jax.random.normal(kb1, (1, D_out), dtype=jnp.float32) * 0.1
    b2 = jax.random.normal(kb2, (1, D_out), dtype=jnp.float32) * 0.1
    b3 = jax.random.normal(kb3, (1, D_out), dtype=jnp.float32) * 0.1

    # Init-time stacking happens here, outside the per-call hot path.
    triplet_avg = make_triplet_avg(w1, w2, w3, b1, b2, b3)

    out = jax.block_until_ready(triplet_avg(x))

    ref = reference(x, w1, w2, w3, b1, b2, b3)
    assert out.shape == (B, D_out)
    # Loose-ish tolerance: XLA's default f32 matmul on TPU and the Pallas MXU
    # path re-associate differently, and *1/3 differs from /3.0 by <=1 ulp.
    assert jnp.allclose(out, ref, atol=1e-4, rtol=1e-4)

    print("KERNEL_OK")
</pallas_src>

<mosaic_0001>
module attributes {stable_mosaic.version = 11 : i64} {
  func.func @_triplet_avg_kernel(%arg0: i32, %arg1: memref<3x8x32xf32, #tpu.memory_space<vmem>>, %arg2: memref<3x32x32xf32, #tpu.memory_space<vmem>>, %arg3: memref<1x32xf32, #tpu.memory_space<vmem>>, %arg4: memref<8x32xf32, #tpu.memory_space<vmem>>) attributes {dimension_semantics = [#tpu.dimension_semantics<parallel>], iteration_bounds = array<i64: 1>, scalar_prefetch = 0 : i64, scratch_operands = 0 : i64, tpu.core_type = #tpu.core_type<tc>, window_params = [{transform_indices = @transform_0, window_bounds = array<i64: 3, 8, 32>}, {pipeline_mode = #tpu.pipeline_mode<synchronous>, transform_indices = @transform_1, window_bounds = array<i64: 3, 32, 32>}, {pipeline_mode = #tpu.pipeline_mode<synchronous>, transform_indices = @transform_2, window_bounds = array<i64: 1, 32>}, {transform_indices = @transform_3, window_bounds = array<i64: 8, 32>}]} {
    %c0 = arith.constant 0 : index
    %c0_0 = arith.constant 0 : index
    %c0_1 = arith.constant 0 : index
    %0 = vector.load %arg1[%c0, %c0_0, %c0_1] : memref<3x8x32xf32, #tpu.memory_space<vmem>>, vector<1x8x32xf32>
    %1 = vector.shape_cast %0 : vector<1x8x32xf32> to vector<8x32xf32>
    %c0_2 = arith.constant 0 : index
    %c0_3 = arith.constant 0 : index
    %c0_4 = arith.constant 0 : index
    %2 = vector.load %arg2[%c0_2, %c0_3, %c0_4] : memref<3x32x32xf32, #tpu.memory_space<vmem>>, vector<1x32x32xf32>
    %3 = vector.shape_cast %2 : vector<1x32x32xf32> to vector<32x32xf32>
    %cst = arith.constant dense<0.000000e+00> : vector<8x32xf32>
    %4 = tpu.matmul %1, %3, %cst {dimension_numbers = #tpu.dot_dimension_numbers<[1], [0], [0], [1], [0, 0, 1, 1], [], []>} : vector<8x32xf32>, vector<32x32xf32>, vector<8x32xf32> -> vector<8x32xf32>
    %c1 = arith.constant 1 : index
    %c0_5 = arith.constant 0 : index
    %c0_6 = arith.constant 0 : index
    %5 = vector.load %arg1[%c1, %c0_5, %c0_6] : memref<3x8x32xf32, #tpu.memory_space<vmem>>, vector<1x8x32xf32>
    %6 = vector.shape_cast %5 : vector<1x8x32xf32> to vector<8x32xf32>
    %c1_7 = arith.constant 1 : index
    %c0_8 = arith.constant 0 : index
    %c0_9 = arith.constant 0 : index
    %7 = vector.load %arg2[%c1_7, %c0_8, %c0_9] : memref<3x32x32xf32, #tpu.memory_space<vmem>>, vector<1x32x32xf32>
    %8 = vector.shape_cast %7 : vector<1x32x32xf32> to vector<32x32xf32>
    %cst_10 = arith.constant dense<0.000000e+00> : vector<8x32xf32>
    %9 = tpu.matmul %6, %8, %cst_10 {dimension_numbers = #tpu.dot_dimension_numbers<[1], [0], [0], [1], [0, 0, 1, 1], [], []>} : vector<8x32xf32>, vector<32x32xf32>, vector<8x32xf32> -> vector<8x32xf32>
    %10 = arith.addf %4, %9 : vector<8x32xf32>
    %c2 = arith.constant 2 : index
    %c0_11 = arith.constant 0 : index
    %c0_12 = arith.constant 0 : index
    %11 = vector.load %arg1[%c2, %c0_11, %c0_12] : memref<3x8x32xf32, #tpu.memory_space<vmem>>, vector<1x8x32xf32>
    %12 = vector.shape_cast %11 : vector<1x8x32xf32> to vector<8x32xf32>
    %c2_13 = arith.constant 2 : index
    %c0_14 = arith.constant 0 : index
    %c0_15 = arith.constant 0 : index
    %13 = vector.load %arg2[%c2_13, %c0_14, %c0_15] : memref<3x32x32xf32, #tpu.memory_space<vmem>>, vector<1x32x32xf32>
    %14 = vector.shape_cast %13 : vector<1x32x32xf32> to vector<32x32xf32>
    %cst_16 = arith.constant dense<0.000000e+00> : vector<8x32xf32>
    %15 = tpu.matmul %12, %14, %cst_16 {dimension_numbers = #tpu.dot_dimension_numbers<[1], [0], [0], [1], [0, 0, 1, 1], [], []>} : vector<8x32xf32>, vector<32x32xf32>, vector<8x32xf32> -> vector<8x32xf32>
    %16 = arith.addf %10, %15 : vector<8x32xf32>
    %c0_17 = arith.constant 0 : index
    %c0_18 = arith.constant 0 : index
    %17 = vector.load %arg3[%c0_17, %c0_18] : memref<1x32xf32, #tpu.memory_space<vmem>>, vector<1x32xf32>
    %18 = vector.broadcast %17 : vector<1x32xf32> to vector<8x32xf32>
    %19 = arith.addf %16, %18 : vector<8x32xf32>
    %cst_19 = arith.constant 0.333333343 : f32
    %20 = vector.broadcast %cst_19 : f32 to vector<8x32xf32>
    %21 = arith.mulf %19, %20 : vector<8x32xf32>
    %c0_20 = arith.constant 0 : index
    %c0_21 = arith.constant 0 : index
    %22 = vector.load %arg4[%c0_20, %c0_21] : memref<8x32xf32, #tpu.memory_space<vmem>>, vector<8x32xf32>
    tpu.vector_store %arg4[%c0_20, %c0_21], %21 {strides = array<i32>} : memref<8x32xf32, #tpu.memory_space<vmem>>, vector<8x32xf32>,
    return
  }
  func.func @transform_0(%arg0: i32) -> (i32, i32, i32) {
    %c0_i32 = arith.constant 0 : i32
    %c0_i32_0 = arith.constant 0 : i32
    %c0_i32_1 = arith.constant 0 : i32
    return %c0_i32, %arg0, %c0_i32_0 : i32, i32, i32
  }
  func.func @transform_1(%arg0: i32) -> (i32, i32, i32) {
    %c0_i32 = arith.constant 0 : i32
    %c0_i32_0 = arith.constant 0 : i32
    %c0_i32_1 = arith.constant 0 : i32
    %c0_i32_2 = arith.constant 0 : i32
    return %c0_i32, %c0_i32_0, %c0_i32_1 : i32, i32, i32
  }
  func.func @transform_2(%arg0: i32) -> (i32, i32) {
    %c0_i32 = arith.constant 0 : i32
    %c0_i32_0 = arith.constant 0 : i32
    %c0_i32_1 = arith.constant 0 : i32
    return %c0_i32, %c0_i32_0 : i32, i32
  }
  func.func @transform_3(%arg0: i32) -> (i32, i32) {
    %c0_i32 = arith.constant 0 : i32
    %c0_i32_0 = arith.constant 0 : i32
    return %arg0, %c0_i32 : i32, i32
  }
}

</mosaic_0001>

<bundles_post_ra>
// kernel: forward.1
= control target key start
LH: loop header
LB: loop body
LE: loop exit
PB: predicated region body
PF: predicated region fallthrough
CT: control target
= control target key end

     0   :  { %8 = vsyncpa [#allocation3], 0  ;;  %s480_s0 = inlined_call_operand.hbm [shape: f32[3,8,32], index: 0, kind: input, shape index: {}]   ;;  %s481_s1 = inlined_call_operand.hbm [shape: f32[3,32,32], index: 1, kind: input, shape index: {}]   ;;  %s482_s2 = inlined_call_operand.vmem [shape: f32[1,32], index: 2, kind: input, shape index: {}]   ;;  %s483_s3 = inlined_call_operand.hbm [shape: f32[8,32], index: 3, kind: output, shape index: {}]  }
   0x1   :  { %9 = vsyncpa [#allocation6], 0 }
   0x2   :  { %10 = vsyncpa [#allocation4], 0  ;;  %s434_s12 = smov [#allocation2]  }
   0x3   :  { %s16_s13 = sshll.u32 %s434_s12, 4  ;;  %s17_s13 = int_to_ptr.vmem [resolvable:$true] %s16_s13 }
   0x4   :  { %s376_s14 = scalar_lea.vmem %s17_s13, 384  ;;  %p381_p1 = scmp.lt.s32.totalorder %s17_s13, %s17_s13 }
   0x5   :  { %p377_p0 = scmp.ne.s32.totalorder %s17_s13, %s376_s14  ;;  %p382_p2 = scmp.lt.s32.totalorder %s376_s14, %s376_s14 }
   0x7   :  { %p383_p3 = por %p382_p2, %p381_p1 }
   0x9   :  { %p384_p4 = pnand %p383_p3, %p377_p0 }
   0xb   :  { %387 = shalt.err (!%p384_p4)
}
   0xc   :  { %s435_s15 = smov 128   ;;  %s436_s16 = smov 8  }
   0xd   :  { %22 = dma.hbm_to_vmem [thread:$0]  %s480_s0, 384, %s17_s13, [#allocation3], %s435_s15, %s435_s15, %s436_s16  }
   0xe   :  { %s437_s19 = smov [#allocation5]  }
   0xf   :  { %s28_s20 = sshll.u32 %s437_s19, 4  ;;  %s29_s20 = int_to_ptr.vmem [resolvable:$true] %s28_s20 }
  0x10   :  { %s396_s21 = scalar_lea.vmem %s29_s20, 1536  ;;  %p401_p6 = scmp.lt.s32.totalorder %s29_s20, %s29_s20 }
  0x11   :  { %p397_p5 = scmp.ne.s32.totalorder %s29_s20, %s396_s21  ;;  %p402_p7 = scmp.lt.s32.totalorder %s396_s21, %s396_s21 }
  0x13   :  { %p403_p8 = por %p402_p7, %p401_p6 }
  0x15   :  { %p404_p9 = pnand %p403_p8, %p397_p5 }
  0x17   :  { %407 = shalt.err (!%p404_p9)
}
  0x18   :  { %34 = dma.hbm_to_vmem [thread:$0]  %s481_s1, 1536, %s29_s20, [#allocation6], %s435_s15, %s435_s15, %s436_s16  }
  0x19   :  { %428 = dma.done.wait [#allocation3], 384  }
  0x1a   :  { %429 = vsyncadd [#allocation3], 4294966912 }
  0x1b   :  { %430 = dma.done.wait [#allocation6], 1536  }
  0x1c   :  { %431 = vsyncadd [#allocation6], 4294965760  ;;  %v438_v0 = vmov 0.0   ;;  %vm439_vm0 = vmmov 0   ;;  %v54_v1 = vld [vmem:[#allocation5 + $0x38] sm:$0xff]  ;;  %v53_v3 = vld [vmem:[#allocation5 + $0x30] sm:$0xff] }
  0x1d   :  { %328 = vmatprep.subr.mxu0 %v438_v0  ;;  %339 = vmatprep.subr.mxu1 %v438_v0  ;;  %v47_v2 = vld [vmem:[#allocation5 + $0x18] sm:$0xff]  ;;  %v46_v4 = vld [vmem:[#allocation5 + $0x10] sm:$0xff]  ;;  %v52_v5 = vld [vmem:[#allocation5 + $0x28] sm:$0xff]  ;;  %vm55_vm1 = vcmask 261120   ;;  %s440_s24 = smov [#allocation7]  }
  0x1e   :  { %336 = vmatprep.mubr.msk.f32.mxu0 %vm439_vm0, %v438_v0  ;;  %347 = vmatprep.mubr.msk.f32.mxu1 %vm439_vm0, %v438_v0  ;;  %v45_v6 = vld [vmem:[#allocation5 + $0x8] sm:$0xff]  ;;  %v51_v7 = vld [vmem:[#allocation5 + $0x20] sm:$0xff]  ;;  %v49_v9 = vld [vmem:[#allocation2 + $0x8] sm:$0xff]  ;;  %s299_s25 = sshll.u32 %s440_s24, 4  ;;  %s300_s25 = int_to_ptr.vmem [resolvable:$true] %s299_s25 }
  0x1f   :  { %329 = vmatpush3.msra.mxu0 %v54_v1  ;;  %340 = vmatpush3.msra.mxu1 %v47_v2  ;;  %v44_v8 = vld [vmem:[#allocation5] sm:$0xff]  ;;  %v43_v10 = vld [vmem:[#allocation2] sm:$0xff]  ;;  %v208_v11 = vld [vmem:[#allocation5 + $0x58] sm:$0xff]  ;;  %s408_s26 = scalar_lea.vmem %s300_s25, 128  ;;  %p413_p11 = scmp.lt.s32.totalorder %s300_s25, %s300_s25 }
  0x20   :  { %330 = vmatprep.subr.mxu0 %v438_v0  ;;  %341 = vmatprep.subr.mxu1 %v438_v0  ;;  %v207_v12 = vld [vmem:[#allocation5 + $0x50] sm:$0xff]  ;;  %v206_v13 = vld [vmem:[#allocation5 + $0x48] sm:$0xff]  ;;  %v205_v14 = vld [vmem:[#allocation5 + $0x40] sm:$0xff]  ;;  %p409_p10 = scmp.ne.s32.totalorder %s300_s25, %s408_s26  ;;  %p414_p12 = scmp.lt.s32.totalorder %s408_s26, %s408_s26 }
  0x21   :  { %331 = vmatpush3.msra.mxu0 %v53_v3  ;;  %342 = vmatpush3.msra.mxu1 %v46_v4  ;;  %v203_v15 = vld [vmem:[#allocation2 + $0x10] sm:$0xff]  ;;  %v312_v22 = vld [vmem:[%s482_s2] ss:$0 sm:$0xff] }
  0x22   :  { %332 = vmatprep.subr.mxu0 %v438_v0  ;;  %343 = vmatprep.subr.mxu1 %v438_v0  ;;  %p415_p13 = por %p414_p12, %p413_p11 }
  0x23   :  { %333 = vmatpush3.msra.mxu0 %v52_v5  ;;  %344 = vmatpush3.msra.mxu1 %v45_v6 }
  0x24   :  { %334 = vmatprep.subr.mxu0 %v438_v0  ;;  %345 = vmatprep.subr.mxu1 %v438_v0  ;;  %p416_p0 = pnand %p415_p13, %p409_p10 }
  0x25   :  { %335 = vmatpush3.msra.mxu0 %v51_v7  ;;  %346 = vmatpush3.msra.mxu1 %v44_v8 }
  0x26   :  { %337 = vmatmul.mubr.msk.f32.vlgmr.msra.gmra.mxu0 %vm55_vm1, %v49_v9  ;;  %350 = vmatprep.subr.mxu0 %v438_v0 }
  0x27   :  { %348 = vmatmul.mubr.msk.f32.vlgmr.msra.gmra.mxu1 %vm55_vm1, %v43_v10  ;;  %351 = vmatpush3.msra.mxu0 %v208_v11 }
  0x28   :  { %352 = vmatprep.subr.mxu0 %v438_v0  ;;  %358 = vmatprep.mubr.msk.f32.mxu0 %vm439_vm0, %v438_v0 }
  0x29   :  { %353 = vmatpush3.msra.mxu0 %v207_v12 }
  0x2a   :  { %354 = vmatprep.subr.mxu0 %v438_v0 }
  0x2b   :  { %355 = vmatpush3.msra.mxu0 %v206_v13 }
  0x2c   :  { %356 = vmatprep.subr.mxu0 %v438_v0 }
  0x2d   :  { %357 = vmatpush3.msra.mxu0 %v205_v14 }
  0x2e   :  { %359 = vmatmul.mubr.msk.f32.vlgmr.msra.gmra.mxu0 %vm55_vm1, %v203_v15 }
  0xe6   :  { %v125_v16 = vpop.f32.mrf.mxu0 }
  0xe7   :  { %v198_v17 = vpop.f32.mrf.mxu1 }
  0xe8   :  { %v338_v18 = vpop.f32.mrf.mxu0  ;;  %v199_v20 = vadd.f32 %v198_v17, %v125_v16 }
  0xe9   :  { %v349_v19 = vpop.f32.mrf.mxu1 }
  0xee   :  { %v278_v21 = vpop.f32.mrf.mxu0 }
  0xef   :  { %v282_v23 = vadd.f32 %v278_v21, %v199_v20 }
  0xf0   :  { %v360_v24 = vpop.f32.mrf.mxu0 }
  0xf1   :  { %v290_v25 = vadd.f32 %v312_v22, %v282_v23 }
  0xf3   :  { %v291_v26 = vmul.f32 0.33333334, %v290_v25 }
  0xf5   :  { %292 = vst.msk [vmem:[#allocation7] sm:$0xff] %vm55_vm1, %v291_v26 }
  0xf6   :  { %419 = shalt.err (!%p416_p0)
}
  0xf7   :  { %302 = dma.vmem_to_hbm [thread:$0]  %s300_s25, 128, %s483_s3, [#allocation4]  }
  0xf8   :  { %432 = dma.done.wait [#allocation4], 128  }
  0xf9   :  { %433 = vsyncadd [#allocation4], 4294967168 }
  0xfa   :  { %306 = vsyncpa [#allocation3], 1 }
  0xfb   :  { %307 = vsyncpa [#allocation6], 1 }
  0xfc   :  { %308 = vsyncpa [#allocation4], 1 }

</bundles_post_ra>
